<compile_context>
chip_gen: v6e
topology: v6e:2x2x1
jax: 0.10.0
libtpu: 0.0.40
codegen_flags: <defaults>
</compile_context>

<pallas_src>
import functools

import jax
import jax.numpy as jnp
from jax.experimental import pallas as pl
from jax.experimental.pallas import tpu as pltpu


def _ghar_kernel(nf_ref, adjt_ref, w_ref, out_ref, *, n_feat, n_hid, batch):
    """Single-invocation GHAR forward.

    nf_ref  : (F*B, N)  node features, feature-major stacked rows (VMEM)
    adjt_ref: (N, N)    adjacency, transposed (VMEM)
    w_ref   : (F*(1+n_hid)+1,)  flat SMEM weights:
                 [w1[0..F-1] | wg[:,0] | wg[:,1] | ... | wg[:,n_hid-1] | b1]
    out_ref : (n_hid*B, N)  relu(H1 + H2), hidden-unit-major rows (VMEM)
    """
    nf = nf_ref[...]                                  # (F*B, N) f32
    adj_t = adjt_ref[...]                             # (N, N)   f32

    # --- ONE stacked MXU matmul, independent of n_hid ---------------------
    # prop[f*B + b, n] = sum_m nf[f*B + b, m] * adj[n, m]
    #                  = (adj @ plane_f)[b, n]
    # NOTE: at larger N cast nf/adj_t to bf16 here (keep f32 accumulation).
    prop = jnp.dot(nf, adj_t, preferred_element_type=jnp.float32)   # (F*B, N)

    # --- H1 = node_feat @ w1 + b1 : raw planes, K=F unrolled on the VPU ---
    h1 = nf[0:batch, :] * w_ref[0]
    for f in range(1, n_feat):
        h1 = h1 + nf[f * batch:(f + 1) * batch, :] * w_ref[f]
    h1 = h1 + w_ref[n_feat * (1 + n_hid)]             # folded bias, (B, N)

    # --- H2_h = sum_f wg[f, h] * prop_f : VPU scalar-combinations ---------
    results = []
    for h in range(n_hid):
        base = n_feat + h * n_feat
        h2 = prop[0:batch, :] * w_ref[base]
        for f in range(1, n_feat):
            h2 = h2 + prop[f * batch:(f + 1) * batch, :] * w_ref[base + f]
        results.append(jnp.maximum(h1 + h2, 0.0))     # (B, N)

    # --- one coalesced store (still masked at N=16; pack graphs into lanes
    #     so last dim reaches a multiple of 128 for unmasked vst) -----------
    res = results[0] if n_hid == 1 else jnp.concatenate(results, axis=0)
    out_ref[...] = res.astype(out_ref.dtype)


def pack_ghar_params(w1, b1, wg):
    """Pack parameters into one flat SMEM vector.

    Call ONCE per parameter update (not per forward call):
      layout = [w1[0..F-1], wg[:,0], wg[:,1], ..., wg[:,n_hid-1], b1]
    """
    return jnp.concatenate([
        jnp.reshape(w1, (-1,)).astype(jnp.float32),
        jnp.reshape(jnp.transpose(wg), (-1,)).astype(jnp.float32),
        jnp.reshape(b1, (-1,)).astype(jnp.float32),
    ])


@jax.jit
def ghar_forward(node_feat, adj, w_packed):
    """node_feat: (B, N, 3) f32; adj: (N, N) f32; w_packed: (3*(1+n_hid)+1,).

    Returns relu(H1 + H2).squeeze(-1), matching torch:
      n_hid == 1 -> (B, N);  n_hid > 1 -> (B, N, n_hid).
    """
    B, N, F = node_feat.shape
    n_hid = (w_packed.shape[0] - 1) // F - 1

    # Per-call layout plumbing (cheap): feature-major stacked rows.
    nf_stacked = jnp.transpose(node_feat, (2, 0, 1)).reshape(F * B, N)
    nf_stacked = nf_stacked.astype(jnp.float32)
    adj_t = jnp.transpose(adj).astype(jnp.float32)

    flops = 2 * F * B * N * N + 2 * (1 + n_hid) * F * B * N
    bytes_accessed = 4 * (F * B * N + N * N + w_packed.shape[0] + n_hid * B * N)

    out = pl.pallas_call(
        functools.partial(_ghar_kernel, n_feat=F, n_hid=n_hid, batch=B),
        out_shape=jax.ShapeDtypeStruct((n_hid * B, N), jnp.float32),
        in_specs=[
            pl.BlockSpec(memory_space=pltpu.MemorySpace.VMEM),   # nf_stacked
            pl.BlockSpec(memory_space=pltpu.MemorySpace.VMEM),   # adj_t
            pl.BlockSpec(memory_space=pltpu.MemorySpace.SMEM),   # flat weights+bias
        ],
        out_specs=pl.BlockSpec(memory_space=pltpu.MemorySpace.VMEM),
        cost_estimate=pl.CostEstimate(
            flops=flops, transcendentals=0, bytes_accessed=bytes_accessed),
    )(nf_stacked, adj_t, w_packed)

    # torch .squeeze(-1): only squeezes when the trailing dim is 1
    if n_hid == 1:
        return out                                        # (B, N)
    return jnp.transpose(out.reshape(n_hid, B, N), (1, 2, 0))   # (B, N, n_hid)


def _reference(node_feat, adj, w1, b1, wg):
    h1 = node_feat @ w1 + jnp.reshape(b1, (1, 1))             # (B, N, 1)
    h2 = jnp.einsum("nm,bmh->bnh", adj, node_feat @ wg)       # (B, N, n_hid)
    res = jax.nn.relu(h1 + h2)
    return res[..., 0] if wg.shape[1] == 1 else res


if __name__ == "__main__":
    B, N, F = 2, 16, 3

    key = jax.random.PRNGKey(0)
    k_nf, k_adj, k_w1, k_b1, k_wg = jax.random.split(key, 5)

    node_feat = jax.random.normal(k_nf, (B, N, F), dtype=jnp.float32)
    adj_raw = jax.random.uniform(k_adj, (N, N), dtype=jnp.float32)
    adj = adj_raw / jnp.sum(adj_raw, axis=-1, keepdims=True)   # row-normalized adjacency

    # Deterministic parameter init (shapes from __init__; not a checkpoint load).
    # linear1: Linear(3, 1) -> torch weight (1, 3); stored transposed as (3, 1).
    w1 = jax.random.uniform(k_w1, (F, 1), dtype=jnp.float32, minval=-0.5, maxval=0.5)
    b1 = jax.random.uniform(k_b1, (1, 1), dtype=jnp.float32, minval=-0.5, maxval=0.5)

    # Check both the typical n_hid=1 config (squeeze -> (B, N)) and n_hid>1.
    for n_hid in (1, 4):
        k_wg_h = jax.random.fold_in(k_wg, n_hid)
        wg = jax.random.uniform(k_wg_h, (F, n_hid), dtype=jnp.float32,
                                minval=-1.0, maxval=1.0)

        w_packed = pack_ghar_params(w1, b1, wg)   # once per parameter update
        out = ghar_forward(node_feat, adj, w_packed)
        out = jax.block_until_ready(out)

        ref = _reference(node_feat, adj, w1, b1, wg)
        assert out.shape == ref.shape, (n_hid, out.shape, ref.shape)
        assert jnp.allclose(out, ref, atol=1e-5, rtol=1e-5), f"mismatch (n_hid={n_hid})"

    # TODO(synk): for production throughput, batch many graphs/time-steps per
    # pallas_call (samples*N >= 128 lanes) and add a parallel grid axis so the
    # second TensorCore on v7x is used; pointless at B=2, N=16.
    print("KERNEL_OK")
</pallas_src>

<mosaic_0001>
module attributes {stable_mosaic.version = 11 : i64} {
  func.func @_ghar_kernel(%arg0: memref<6x16xf32, #tpu.memory_space<vmem>>, %arg1: memref<16x16xf32, #tpu.memory_space<vmem>>, %arg2: memref<7xf32, #tpu.memory_space<smem>>, %arg3: memref<2x16xf32, #tpu.memory_space<vmem>>) attributes {dimension_semantics = [], scalar_prefetch = 0 : i64, scratch_operands = 0 : i64, tpu.core_type = #tpu.core_type<tc>} {
    %c0 = arith.constant 0 : index
    %c0_0 = arith.constant 0 : index
    %0 = vector.load %arg0[%c0, %c0_0] : memref<6x16xf32, #tpu.memory_space<vmem>>, vector<6x16xf32>
    %c0_1 = arith.constant 0 : index
    %c0_2 = arith.constant 0 : index
    %1 = vector.load %arg1[%c0_1, %c0_2] : memref<16x16xf32, #tpu.memory_space<vmem>>, vector<16x16xf32>
    %cst = arith.constant dense<0.000000e+00> : vector<6x16xf32>
    %2 = tpu.matmul %0, %1, %cst {dimension_numbers = #tpu.dot_dimension_numbers<[1], [0], [0], [1], [0, 0, 1, 1], [], []>} : vector<6x16xf32>, vector<16x16xf32>, vector<6x16xf32> -> vector<6x16xf32>
    %3 = vector.extract_strided_slice %0 {offsets = [0, 0], sizes = [2, 16], strides = [1, 1]} : vector<6x16xf32> to vector<2x16xf32>
    %c0_3 = arith.constant 0 : index
    %4 = memref.load %arg2[%c0_3] : memref<7xf32, #tpu.memory_space<smem>>
    %5 = vector.broadcast %4 : f32 to vector<2x16xf32>
    %6 = arith.mulf %3, %5 : vector<2x16xf32>
    %7 = vector.extract_strided_slice %0 {offsets = [2, 0], sizes = [2, 16], strides = [1, 1]} : vector<6x16xf32> to vector<2x16xf32>
    %c1 = arith.constant 1 : index
    %8 = memref.load %arg2[%c1] : memref<7xf32, #tpu.memory_space<smem>>
    %9 = vector.broadcast %8 : f32 to vector<2x16xf32>
    %10 = arith.mulf %7, %9 : vector<2x16xf32>
    %11 = arith.addf %6, %10 : vector<2x16xf32>
    %12 = vector.extract_strided_slice %0 {offsets = [4, 0], sizes = [2, 16], strides = [1, 1]} : vector<6x16xf32> to vector<2x16xf32>
    %c2 = arith.constant 2 : index
    %13 = memref.load %arg2[%c2] : memref<7xf32, #tpu.memory_space<smem>>
    %14 = vector.broadcast %13 : f32 to vector<2x16xf32>
    %15 = arith.mulf %12, %14 : vector<2x16xf32>
    %16 = arith.addf %11, %15 : vector<2x16xf32>
    %c6 = arith.constant 6 : index
    %17 = memref.load %arg2[%c6] : memref<7xf32, #tpu.memory_space<smem>>
    %18 = vector.broadcast %17 : f32 to vector<2x16xf32>
    %19 = arith.addf %16, %18 : vector<2x16xf32>
    %20 = vector.extract_strided_slice %2 {offsets = [0, 0], sizes = [2, 16], strides = [1, 1]} : vector<6x16xf32> to vector<2x16xf32>
    %c3 = arith.constant 3 : index
    %21 = memref.load %arg2[%c3] : memref<7xf32, #tpu.memory_space<smem>>
    %22 = vector.broadcast %21 : f32 to vector<2x16xf32>
    %23 = arith.mulf %20, %22 : vector<2x16xf32>
    %24 = vector.extract_strided_slice %2 {offsets = [2, 0], sizes = [2, 16], strides = [1, 1]} : vector<6x16xf32> to vector<2x16xf32>
    %c4 = arith.constant 4 : index
    %25 = memref.load %arg2[%c4] : memref<7xf32, #tpu.memory_space<smem>>
    %26 = vector.broadcast %25 : f32 to vector<2x16xf32>
    %27 = arith.mulf %24, %26 : vector<2x16xf32>
    %28 = arith.addf %23, %27 : vector<2x16xf32>
    %29 = vector.extract_strided_slice %2 {offsets = [4, 0], sizes = [2, 16], strides = [1, 1]} : vector<6x16xf32> to vector<2x16xf32>
    %c5 = arith.constant 5 : index
    %30 = memref.load %arg2[%c5] : memref<7xf32, #tpu.memory_space<smem>>
    %31 = vector.broadcast %30 : f32 to vector<2x16xf32>
    %32 = arith.mulf %29, %31 : vector<2x16xf32>
    %33 = arith.addf %28, %32 : vector<2x16xf32>
    %34 = arith.addf %19, %33 : vector<2x16xf32>
    %cst_4 = arith.constant 0.000000e+00 : f32
    %35 = vector.broadcast %cst_4 : f32 to vector<2x16xf32>
    %36 = arith.maximumf %34, %35 : vector<2x16xf32>
    %c0_5 = arith.constant 0 : index
    %c0_6 = arith.constant 0 : index
    %37 = vector.load %arg3[%c0_5, %c0_6] : memref<2x16xf32, #tpu.memory_space<vmem>>, vector<2x16xf32>
    tpu.vector_store %arg3[%c0_5, %c0_6], %36 {strides = array<i32>} : memref<2x16xf32, #tpu.memory_space<vmem>>, vector<2x16xf32>,
    return
  }
}

</mosaic_0001>

<bundles_post_ra>
// kernel: ghar_forward.1
= control target key start
LH: loop header
LB: loop body
LE: loop exit
PB: predicated region body
PF: predicated region fallthrough
CT: control target
= control target key end

     0   :  { %8 = vsyncpa [#allocation4], 0  ;;  %s257_s0 = inlined_call_operand.vmem [shape: f32[6,16], index: 0, kind: input, shape index: {}]   ;;  %s258_s1 = inlined_call_operand.vmem [shape: f32[16,16], index: 1, kind: input, shape index: {}]   ;;  %s259_s2 = inlined_call_operand.vmem [shape: f32[7], index: 2, kind: input, shape index: {}]   ;;  %s260_s3 = inlined_call_operand.hbm [shape: f32[2,16], index: 3, kind: output, shape index: {}]  }
   0x1   :  { %9 = vsyncpa [#allocation3], 0  ;;  %s20_s14 = sshll.u32 %s259_s2, 4  ;;  %s21_s14 = int_to_ptr.vmem [resolvable:$true] %s20_s14 }
   0x2   :  { %s182_s15 = scalar_lea.vmem %s21_s14, 16  ;;  %p187_p1 = scmp.lt.s32.totalorder %s21_s14, %s21_s14 }
   0x3   :  { %p183_p0 = scmp.ne.s32.totalorder %s21_s14, %s182_s15  ;;  %p188_p2 = scmp.lt.s32.totalorder %s182_s15, %s182_s15 }
   0x5   :  { %p189_p3 = por %p188_p2, %p187_p1 }
   0x7   :  { %p190_p4 = pnand %p189_p3, %p183_p0 }
   0x9   :  { %193 = shalt.err (!%p190_p4)
}
   0xa   :  { %s218_s16 = smov [#allocation2]  }
   0xb   :  { %23 = dma.vmem_to_smem %s21_s14, 16, %s218_s16, [#allocation4]  }
   0xc   :  { %214 = dma.done.wait [#allocation4], 16  }
   0xd   :  { %215 = vsyncadd [#allocation4], 4294967280 }
   0xe   :  { %27 = sfence }
   0xf   :  { %v30_v0 = vld [vmem:[%s258_s1 + $0x8] sm:$0xff]  ;;  %v219_v1 = vmov 0.0   ;;  %v29_v2 = vld [vmem:[%s258_s1] sm:$0xff]  ;;  %vm220_vm0 = vmmov 0   ;;  %vm31_vm1 = vcmask 130048   ;;  %s162_s22 = sld [smem:[#allocation2 + $0x1]] }
  0x10   :  { %171 = vmatprep.subr.mxu0 %v219_v1  ;;  %175 = vmatprep.mubr.msk.f32.mxu0 %vm220_vm0, %v219_v1  ;;  %v28_v3 = vld [vmem:[%s257_s0] sm:$0x3f]  ;;  %s105_s23 = sld [smem:[#allocation2]]  ;;  %s221_s0 = smov [#allocation5]   ;;  %vm144_vm2 = vcmask 123904  }
  0x11   :  { %172 = vmatpush3.msra.mxu0 %v30_v0  ;;  %s163_s24 = sld [smem:[#allocation2 + $0x2]]  ;;  %s152_s28 = sshll.u32 %s221_s0, 4  ;;  %s153_s28 = int_to_ptr.vmem [resolvable:$true] %s152_s28 }
  0x12   :  { %173 = vmatprep.subr.mxu0 %v219_v1  ;;  %s166_s25 = sld [smem:[#allocation2 + $0x4]]  ;;  %s194_s29 = scalar_lea.vmem %s153_s28, 32 }
  0x13   :  { %174 = vmatpush3.msra.mxu0 %v29_v2  ;;  %s167_s1 = sld [smem:[#allocation2 + $0x5]]  ;;  %p195_p5 = scmp.ne.s32.totalorder %s153_s28, %s194_s29 }
  0x14   :  { %176 = vmatmul.mubr.msk.f32.vlgmr.msra.gmra.mxu0 %vm31_vm1, %v28_v3  ;;  %s165_s26 = sld [smem:[#allocation2 + $0x3]]  ;;  %p199_p6 = scmp.lt.s32.totalorder %s153_s28, %s153_s28 }
  0x15   :  { %v109_v4 = vstv %s162_s22  ;;  %s164_s27 = sld [smem:[#allocation2 + $0x6]]  ;;  %p200_p7 = scmp.lt.s32.totalorder %s194_s29, %s194_s29 }
  0x16   :  { %v110_v5 = vmul.f32 %v109_v4, %v28_v3  ;;  %v106_v6 = vstv %s105_s23 }
  0x17   :  { %v116_v7 = vstv %s163_s24  ;;  %v107_v8 = vmul.f32 %v106_v6, %v28_v3  ;;  %p201_p8 = por %p200_p7, %p199_p6 }
  0x18   :  { %v112_v9 = vrot.slane %v110_v5, 2  ;;  %v117_v10 = vmul.f32 %v116_v7, %v28_v3  ;;  %v129_v13 = vstv %s166_s25 }
  0x19   :  { %v136_v14 = vstv %s167_s1  ;;  %p202_p9 = pnand %p201_p8, %p195_p5 }
  0x1a   :  { %v119_v11 = vrot.slane %v117_v10, 4  ;;  %v114_v12 = vadd.f32 %v112_v9, %v107_v8  ;;  %v126_v16 = vstv %s165_s26 }
  0x1b   :  { %v123_v21 = vstv %s164_s27 }
  0x1c   :  { %v121_v19 = vadd.f32 %v119_v11, %v114_v12 }
  0x1e   :  { %v124_v26 = vadd.f32 %v123_v21, %v121_v19 }
  0xd4   :  { %v101_v15 = vpop.f32.mrf.mxu0 }
  0xd5   :  { %v130_v17 = vmul.f32 %v129_v13, %v101_v15  ;;  %v137_v18 = vmul.f32 %v136_v14, %v101_v15  ;;  %v127_v22 = vmul.f32 %v126_v16, %v101_v15 }
  0xd6   :  { %v177_v20 = vpop.f32.mrf.mxu0 }
  0xd7   :  { %v132_v23 = vrot.slane %v130_v17, 2  ;;  %v139_v25 = vrot.slane %v137_v18, 4 }
  0xd9   :  { %v134_v24 = vadd.f32 %v132_v23, %v127_v22 }
  0xdb   :  { %v141_v27 = vadd.f32 %v139_v25, %v134_v24 }
  0xdd   :  { %v142_v28 = vadd.f32 %v141_v27, %v124_v26 }
  0xdf   :  { %v143_v29 = vmax.f32 %v142_v28, 0.0 }
  0xe1   :  { %145 = vst.msk [vmem:[#allocation5] sm:$0x3] %vm144_vm2, %v143_v29 }
  0xe2   :  { %205 = shalt.err (!%p202_p9)
}
  0xe3   :  { %155 = dma.vmem_to_hbm [thread:$0]  %s153_s28, 32, %s260_s3, [#allocation3]  }
  0xe4   :  { %216 = dma.done.wait [#allocation3], 32  }
  0xe5   :  { %217 = vsyncadd [#allocation3], 4294967264 }
  0xe6   :  { %159 = vsyncpa [#allocation3], 1 }
  0xe7   :  { %160 = vsyncpa [#allocation4], 1 }

</bundles_post_ra>
